<compile_context>
chip_gen: v5e
topology: v5e:2x2
jax: 0.10.0
libtpu: 0.0.40
codegen_flags: <defaults>
</compile_context>

<pallas_src>
import jax
import jax.numpy as jnp
from jax import lax
from jax.experimental import pallas as pl
from jax.experimental.pallas import tpu as pltpu


def _make_kernel(H, W, C):
    HW = H * W

    def kernel(x_ref, we_ref, w1_ref, b1_ref, w2_ref, b2_ref, o_ref):
        x = x_ref[0]                                     # (C, HW) f32, HW on lanes

        # Flattened-pixel coordinates, hoisted once.
        idx = lax.broadcasted_iota(jnp.int32, (1, HW), 1)
        col = idx % W

        # Left / right neighbours with the column masks folded in:
        # 2 lane rolls + 2 selects total (rolls are circular -> mask the wrap).
        left = jnp.where(col >= 1,
                         pltpu.roll(x, shift=1, axis=1), 0.0)        # x[p-1]
        right = jnp.where(col <= W - 2,
                          pltpu.roll(x, shift=HW - 1, axis=1), 0.0)  # x[p+1]

        # One kernel-row of taps evaluated at UNSHIFTED positions.
        # we_ref: (9, C_out, C_in), tap index ky*3 + kx (kx: 0=left,1=mid,2=right).
        # No im2col scratch: accumulate the 3x3 conv on the fly (9 K=C matmuls).
        def row_contrib(ky):
            y = jnp.dot(we_ref[ky * 3 + 0], left,
                        preferred_element_type=jnp.float32)
            y = y + jnp.dot(we_ref[ky * 3 + 1], x,
                            preferred_element_type=jnp.float32)
            y = y + jnp.dot(we_ref[ky * 3 + 2], right,
                            preferred_element_type=jnp.float32)
            return y                                     # (C, HW)

        y_top = row_contrib(0)    # taps reading source row y-1
        y_mid = row_contrib(1)
        y_bot = row_contrib(2)    # taps reading source row y+1

        # Realize the +/-1-row shifts on the (C, HW) results: a +/-W lane shift
        # (vreg-granularity when W % 128 == 0) plus one row mask each.
        edge = y_mid
        edge = edge + jnp.where(idx >= W,
                                pltpu.roll(y_top, shift=W, axis=1), 0.0)
        edge = edge + jnp.where(idx < (H - 1) * W,
                                pltpu.roll(y_bot, shift=HW - W, axis=1), 0.0)

        # Attention head: 1x1 conv + folded BN + ReLU.
        h = jnp.dot(w1_ref[...], edge,
                    preferred_element_type=jnp.float32) + b1_ref[...]   # (Crp, HW)
        h = jnp.maximum(h, 0.0)

        # 1x1 conv + folded BN + sigmoid.
        logits = jnp.dot(w2_ref[...], h,
                         preferred_element_type=jnp.float32) + b2_ref[...]  # (C, HW)
        attn = jax.nn.sigmoid(logits)

        # Gate the input (lane-dense elementwise + store).
        o_ref[0] = (x * attn).astype(o_ref.dtype)

    return kernel


def edge_attention_block(x, w_edge_hwio, w1f, b1f, w2f, b2f):
    """x: (N, C, H, W) float32 (NCHW, like the PyTorch module).

    w_edge_hwio: (3, 3, C, C) HWIO conv weight.
    w1f/b1f, w2f/b2f: BN-folded 1x1-conv params, channels-first
      w1f: (Crp, C), b1f: (Crp, 1), w2f: (C, Crp), b2f: (C, 1).
    """
    N, C, H, W = x.shape
    HW = H * W
    Crp = w1f.shape[0]

    # Keep all stores/rolls unmasked & aligned (perf review item 8).
    assert C % 8 == 0, "C must be a multiple of 8 (sublane alignment)"
    assert HW % 128 == 0, "H*W must be a multiple of 128 (lane alignment)"

    x_flat = x.reshape(N, C, HW)                         # free contiguous reshape
    # (9, C_out, C_in) with tap index ky*3 + kx — matches the kernel's order.
    we9 = jnp.transpose(w_edge_hwio, (0, 1, 3, 2)).reshape(9, C, C)

    kernel = _make_kernel(H, W, C)

    out_flat = pl.pallas_call(
        kernel,
        out_shape=jax.ShapeDtypeStruct((N, C, HW), x.dtype),
        grid=(N,),
        in_specs=[
            pl.BlockSpec((1, C, HW), lambda n: (n, 0, 0)),   # x (per image)
            pl.BlockSpec((9, C, C), lambda n: (0, 0, 0)),    # 3x3 taps
            pl.BlockSpec((Crp, C), lambda n: (0, 0)),        # w1 (folded)
            pl.BlockSpec((Crp, 1), lambda n: (0, 0)),        # b1 (folded)
            pl.BlockSpec((C, Crp), lambda n: (0, 0)),        # w2 (folded)
            pl.BlockSpec((C, 1), lambda n: (0, 0)),          # b2 (folded)
        ],
        out_specs=pl.BlockSpec((1, C, HW), lambda n: (n, 0, 0)),
        compiler_params=pltpu.CompilerParams(
            dimension_semantics=("parallel",),       # megacore over batch
            vmem_limit_bytes=48 * 1024 * 1024,       # headroom on v7x (64 MiB/TC)
        ),
    )(x_flat, we9, w1f, b1f, w2f, b2f)

    return out_flat.reshape(N, C, H, W)


def _fold_bn(w, b, gamma, beta, mean, var, eps=1e-5):
    """Fold inference BatchNorm into a channels-first matmul.

    w: (Cout, Cin), b: (Cout,) -> returns (Cout, Cin) weight, (Cout, 1) bias."""
    s = gamma / jnp.sqrt(var + eps)
    wf = w * s[:, None]
    bf = (b - mean) * s + beta
    return wf, bf.reshape(-1, 1)


def _reference(x, w_edge_hwio, w1f, b1f, w2f, b2f):
    """Pure-JAX NCHW reference with the same folded parameters."""
    edge = lax.conv_general_dilated(
        x, w_edge_hwio, window_strides=(1, 1), padding="SAME",
        dimension_numbers=("NCHW", "HWIO", "NCHW"))
    h = jnp.maximum(jnp.einsum("rc,nchw->nrhw", w1f, edge)
                    + b1f.reshape(1, -1, 1, 1), 0.0)
    a = jax.nn.sigmoid(jnp.einsum("cr,nrhw->nchw", w2f, h)
                       + b2f.reshape(1, -1, 1, 1))
    return x * a


if __name__ == "__main__":
    N, C, H, W = 2, 8, 16, 16
    Cr = C // 4

    key = jax.random.PRNGKey(0)
    ks = jax.random.split(key, 10)

    x = jax.random.normal(ks[0], (N, C, H, W), dtype=jnp.float32)

    # Synthetic parameters (shapes per the nn.Module __init__).
    w_edge = jax.random.normal(ks[1], (3, 3, C, C), dtype=jnp.float32) * 0.1   # HWIO
    w1 = jax.random.normal(ks[2], (Cr, C), dtype=jnp.float32) * 0.2            # (Cout, Cin)
    b1 = jax.random.normal(ks[3], (Cr,), dtype=jnp.float32) * 0.1
    w2 = jax.random.normal(ks[4], (C, Cr), dtype=jnp.float32) * 0.2
    b2 = jax.random.normal(ks[5], (C,), dtype=jnp.float32) * 0.1

    # BatchNorm params (inference mode, running statistics).
    g1 = jax.random.normal(ks[6], (Cr,)) * 0.1 + 1.0
    be1 = jax.random.normal(ks[7], (Cr,)) * 0.1
    m1 = jnp.zeros((Cr,)); v1 = jnp.ones((Cr,))
    g2 = jax.random.normal(ks[8], (C,)) * 0.1 + 1.0
    be2 = jax.random.normal(ks[9], (C,)) * 0.1
    m2 = jnp.zeros((C,)); v2 = jnp.ones((C,))

    w1f, b1f = _fold_bn(w1, b1, g1, be1, m1, v1)   # (Cr, C), (Cr, 1)
    w2f, b2f = _fold_bn(w2, b2, g2, be2, m2, v2)   # (C, Cr), (C, 1)

    # Zero-pad the bottleneck dim Cr -> multiple of 8 (numerically exact:
    # padded rows of h are ReLU(0)=0 and hit zero columns of w2).
    Crp = max(8, -(-Cr // 8) * 8)
    w1p = jnp.pad(w1f, ((0, Crp - Cr), (0, 0)))
    b1p = jnp.pad(b1f, ((0, Crp - Cr), (0, 0)))
    w2p = jnp.pad(w2f, ((0, 0), (0, Crp - Cr)))

    out = edge_attention_block(x, w_edge, w1p, b1p, w2p, b2f)
    out = jax.block_until_ready(out)

    ref = _reference(x, w_edge, w1p, b1p, w2p, b2f)
    assert jnp.allclose(out, ref, atol=1e-4, rtol=1e-4), "mismatch vs reference"

    print("KERNEL_OK")
</pallas_src>

<mosaic_0001>
module attributes {stable_mosaic.version = 11 : i64} {
  func.func @kernel(%arg0: i32, %arg1: memref<1x8x256xf32, #tpu.memory_space<vmem>>, %arg2: memref<9x8x8xf32, #tpu.memory_space<vmem>>, %arg3: memref<8x8xf32, #tpu.memory_space<vmem>>, %arg4: memref<8x1xf32, #tpu.memory_space<vmem>>, %arg5: memref<8x8xf32, #tpu.memory_space<vmem>>, %arg6: memref<8x1xf32, #tpu.memory_space<vmem>>, %arg7: memref<1x8x256xf32, #tpu.memory_space<vmem>>) attributes {dimension_semantics = [#tpu.dimension_semantics<parallel>], iteration_bounds = array<i64: 2>, scalar_prefetch = 0 : i64, scratch_operands = 0 : i64, tpu.core_type = #tpu.core_type<tc>, window_params = [{transform_indices = @transform_0, window_bounds = array<i64: 1, 8, 256>}, {pipeline_mode = #tpu.pipeline_mode<synchronous>, transform_indices = @transform_1, window_bounds = array<i64: 9, 8, 8>}, {pipeline_mode = #tpu.pipeline_mode<synchronous>, transform_indices = @transform_2, window_bounds = array<i64: 8, 8>}, {pipeline_mode = #tpu.pipeline_mode<synchronous>, transform_indices = @transform_3, window_bounds = array<i64: 8, 1>}, {pipeline_mode = #tpu.pipeline_mode<synchronous>, transform_indices = @transform_4, window_bounds = array<i64: 8, 8>}, {pipeline_mode = #tpu.pipeline_mode<synchronous>, transform_indices = @transform_5, window_bounds = array<i64: 8, 1>}, {transform_indices = @transform_6, window_bounds = array<i64: 1, 8, 256>}]} {
    %c0 = arith.constant 0 : index
    %c0_0 = arith.constant 0 : index
    %c0_1 = arith.constant 0 : index
    %0 = vector.load %arg1[%c0, %c0_0, %c0_1] : memref<1x8x256xf32, #tpu.memory_space<vmem>>, vector<1x8x256xf32>
    %1 = vector.shape_cast %0 : vector<1x8x256xf32> to vector<8x256xf32>
    %2 = tpu.iota {dimensions = array<i32: 1>} : vector<1x256xi32>
    %c16_i32 = arith.constant 16 : i32
    %c0_i32 = arith.constant 0 : i32
    %3 = arith.cmpi eq, %c16_i32, %c0_i32 : i32
    %c1_i32 = arith.constant 1 : i32
    %4 = arith.select %3, %c1_i32, %c16_i32 : i32
    %5 = vector.broadcast %4 : i32 to vector<1x256xi32>
    %6 = arith.remsi %2, %5 : vector<1x256xi32>
    %c0_i32_2 = arith.constant 0 : i32
    %7 = vector.broadcast %c0_i32_2 : i32 to vector<1x256xi32>
    %8 = arith.cmpi ne, %6, %7 : vector<1x256xi32>
    %c0_i32_3 = arith.constant 0 : i32
    %9 = vector.broadcast %c0_i32_3 : i32 to vector<1x256xi32>
    %10 = arith.cmpi slt, %6, %9 : vector<1x256xi32>
    %c0_i32_4 = arith.constant 0 : i32
    %11 = arith.cmpi slt, %4, %c0_i32_4 : i32
    %12 = vector.broadcast %11 : i1 to vector<1x256xi1>
    %13 = vector.broadcast %12 : vector<1x256xi1> to vector<1x256xi1>
    %14 = arith.xori %10, %13 : vector<1x256xi1>
    %15 = arith.andi %14, %8 : vector<1x256xi1>
    %16 = vector.broadcast %4 : i32 to vector<1x256xi32>
    %17 = arith.addi %6, %16 : vector<1x256xi32>
    %18 = arith.select %15, %17, %6 : vector<1x256xi1>, vector<1x256xi32>
    %c1_i32_5 = arith.constant 1 : i32
    %19 = vector.broadcast %c1_i32_5 : i32 to vector<1x256xi32>
    %20 = arith.cmpi sge, %18, %19 : vector<1x256xi32>
    %c1_i32_6 = arith.constant 1 : i32
    %21 = tpu.dynamic_rotate %1 by %c1_i32_6 dim 1 : vector<8x256xf32>, i32 -> vector<8x256xf32>
    %cst = arith.constant 0.000000e+00 : f32
    %22 = vector.shape_cast %20 : vector<1x256xi1> to vector<1x256xi1>
    %23 = vector.broadcast %22 : vector<1x256xi1> to vector<8x256xi1>
    %24 = vector.broadcast %cst : f32 to vector<8x256xf32>
    %25 = arith.select %23, %21, %24 : vector<8x256xi1>, vector<8x256xf32>
    %c14_i32 = arith.constant 14 : i32
    %26 = vector.broadcast %c14_i32 : i32 to vector<1x256xi32>
    %27 = arith.cmpi sle, %18, %26 : vector<1x256xi32>
    %c255_i32 = arith.constant 255 : i32
    %28 = tpu.dynamic_rotate %1 by %c255_i32 dim 1 : vector<8x256xf32>, i32 -> vector<8x256xf32>
    %cst_7 = arith.constant 0.000000e+00 : f32
    %29 = vector.shape_cast %27 : vector<1x256xi1> to vector<1x256xi1>
    %30 = vector.broadcast %29 : vector<1x256xi1> to vector<8x256xi1>
    %31 = vector.broadcast %cst_7 : f32 to vector<8x256xf32>
    %32 = arith.select %30, %28, %31 : vector<8x256xi1>, vector<8x256xf32>
    %c0_8 = arith.constant 0 : index
    %c0_9 = arith.constant 0 : index
    %c0_10 = arith.constant 0 : index
    %33 = vector.load %arg2[%c0_8, %c0_9, %c0_10] : memref<9x8x8xf32, #tpu.memory_space<vmem>>, vector<1x8x8xf32>
    %34 = vector.shape_cast %33 : vector<1x8x8xf32> to vector<8x8xf32>
    %cst_11 = arith.constant dense<0.000000e+00> : vector<8x256xf32>
    %35 = tpu.matmul %34, %25, %cst_11 {dimension_numbers = #tpu.dot_dimension_numbers<[1], [0], [0], [1], [0, 0, 1, 1], [], []>} : vector<8x8xf32>, vector<8x256xf32>, vector<8x256xf32> -> vector<8x256xf32>
    %c1 = arith.constant 1 : index
    %c0_12 = arith.constant 0 : index
    %c0_13 = arith.constant 0 : index
    %36 = vector.load %arg2[%c1, %c0_12, %c0_13] : memref<9x8x8xf32, #tpu.memory_space<vmem>>, vector<1x8x8xf32>
    %37 = vector.shape_cast %36 : vector<1x8x8xf32> to vector<8x8xf32>
    %cst_14 = arith.constant dense<0.000000e+00> : vector<8x256xf32>
    %38 = tpu.matmul %37, %1, %cst_14 {dimension_numbers = #tpu.dot_dimension_numbers<[1], [0], [0], [1], [0, 0, 1, 1], [], []>} : vector<8x8xf32>, vector<8x256xf32>, vector<8x256xf32> -> vector<8x256xf32>
    %39 = arith.addf %35, %38 : vector<8x256xf32>
    %c2 = arith.constant 2 : index
    %c0_15 = arith.constant 0 : index
    %c0_16 = arith.constant 0 : index
    %40 = vector.load %arg2[%c2, %c0_15, %c0_16] : memref<9x8x8xf32, #tpu.memory_space<vmem>>, vector<1x8x8xf32>
    %41 = vector.shape_cast %40 : vector<1x8x8xf32> to vector<8x8xf32>
    %cst_17 = arith.constant dense<0.000000e+00> : vector<8x256xf32>
    %42 = tpu.matmul %41, %32, %cst_17 {dimension_numbers = #tpu.dot_dimension_numbers<[1], [0], [0], [1], [0, 0, 1, 1], [], []>} : vector<8x8xf32>, vector<8x256xf32>, vector<8x256xf32> -> vector<8x256xf32>
    %43 = arith.addf %39, %42 : vector<8x256xf32>
    %c3 = arith.constant 3 : index
    %c0_18 = arith.constant 0 : index
    %c0_19 = arith.constant 0 : index
    %44 = vector.load %arg2[%c3, %c0_18, %c0_19] : memref<9x8x8xf32, #tpu.memory_space<vmem>>, vector<1x8x8xf32>
    %45 = vector.shape_cast %44 : vector<1x8x8xf32> to vector<8x8xf32>
    %cst_20 = arith.constant dense<0.000000e+00> : vector<8x256xf32>
    %46 = tpu.matmul %45, %25, %cst_20 {dimension_numbers = #tpu.dot_dimension_numbers<[1], [0], [0], [1], [0, 0, 1, 1], [], []>} : vector<8x8xf32>, vector<8x256xf32>, vector<8x256xf32> -> vector<8x256xf32>
    %c4 = arith.constant 4 : index
    %c0_21 = arith.constant 0 : index
    %c0_22 = arith.constant 0 : index
    %47 = vector.load %arg2[%c4, %c0_21, %c0_22] : memref<9x8x8xf32, #tpu.memory_space<vmem>>, vector<1x8x8xf32>
    %48 = vector.shape_cast %47 : vector<1x8x8xf32> to vector<8x8xf32>
    %cst_23 = arith.constant dense<0.000000e+00> : vector<8x256xf32>
    %49 = tpu.matmul %48, %1, %cst_23 {dimension_numbers = #tpu.dot_dimension_numbers<[1], [0], [0], [1], [0, 0, 1, 1], [], []>} : vector<8x8xf32>, vector<8x256xf32>, vector<8x256xf32> -> vector<8x256xf32>
    %50 = arith.addf %46, %49 : vector<8x256xf32>
    %c5 = arith.constant 5 : index
    %c0_24 = arith.constant 0 : index
    %c0_25 = arith.constant 0 : index
    %51 = vector.load %arg2[%c5, %c0_24, %c0_25] : memref<9x8x8xf32, #tpu.memory_space<vmem>>, vector<1x8x8xf32>
    %52 = vector.shape_cast %51 : vector<1x8x8xf32> to vector<8x8xf32>
    %cst_26 = arith.constant dense<0.000000e+00> : vector<8x256xf32>
    %53 = tpu.matmul %52, %32, %cst_26 {dimension_numbers = #tpu.dot_dimension_numbers<[1], [0], [0], [1], [0, 0, 1, 1], [], []>} : vector<8x8xf32>, vector<8x256xf32>, vector<8x256xf32> -> vector<8x256xf32>
    %54 = arith.addf %50, %53 : vector<8x256xf32>
    %c6 = arith.constant 6 : index
    %c0_27 = arith.constant 0 : index
    %c0_28 = arith.constant 0 : index
    %55 = vector.load %arg2[%c6, %c0_27, %c0_28] : memref<9x8x8xf32, #tpu.memory_space<vmem>>, vector<1x8x8xf32>
    %56 = vector.shape_cast %55 : vector<1x8x8xf32> to vector<8x8xf32>
    %cst_29 = arith.constant dense<0.000000e+00> : vector<8x256xf32>
    %57 = tpu.matmul %56, %25, %cst_29 {dimension_numbers = #tpu.dot_dimension_numbers<[1], [0], [0], [1], [0, 0, 1, 1], [], []>} : vector<8x8xf32>, vector<8x256xf32>, vector<8x256xf32> -> vector<8x256xf32>
    %c7 = arith.constant 7 : index
    %c0_30 = arith.constant 0 : index
    %c0_31 = arith.constant 0 : index
    %58 = vector.load %arg2[%c7, %c0_30, %c0_31] : memref<9x8x8xf32, #tpu.memory_space<vmem>>, vector<1x8x8xf32>
    %59 = vector.shape_cast %58 : vector<1x8x8xf32> to vector<8x8xf32>
    %cst_32 = arith.constant dense<0.000000e+00> : vector<8x256xf32>
    %60 = tpu.matmul %59, %1, %cst_32 {dimension_numbers = #tpu.dot_dimension_numbers<[1], [0], [0], [1], [0, 0, 1, 1], [], []>} : vector<8x8xf32>, vector<8x256xf32>, vector<8x256xf32> -> vector<8x256xf32>
    %61 = arith.addf %57, %60 : vector<8x256xf32>
    %c8 = arith.constant 8 : index
    %c0_33 = arith.constant 0 : index
    %c0_34 = arith.constant 0 : index
    %62 = vector.load %arg2[%c8, %c0_33, %c0_34] : memref<9x8x8xf32, #tpu.memory_space<vmem>>, vector<1x8x8xf32>
    %63 = vector.shape_cast %62 : vector<1x8x8xf32> to vector<8x8xf32>
    %cst_35 = arith.constant dense<0.000000e+00> : vector<8x256xf32>
    %64 = tpu.matmul %63, %32, %cst_35 {dimension_numbers = #tpu.dot_dimension_numbers<[1], [0], [0], [1], [0, 0, 1, 1], [], []>} : vector<8x8xf32>, vector<8x256xf32>, vector<8x256xf32> -> vector<8x256xf32>
    %65 = arith.addf %61, %64 : vector<8x256xf32>
    %c16_i32_36 = arith.constant 16 : i32
    %66 = vector.broadcast %c16_i32_36 : i32 to vector<1x256xi32>
    %67 = arith.cmpi sge, %2, %66 : vector<1x256xi32>
    %c16_i32_37 = arith.constant 16 : i32
    %68 = tpu.dynamic_rotate %43 by %c16_i32_37 dim 1 : vector<8x256xf32>, i32 -> vector<8x256xf32>
    %cst_38 = arith.constant 0.000000e+00 : f32
    %69 = vector.shape_cast %67 : vector<1x256xi1> to vector<1x256xi1>
    %70 = vector.broadcast %69 : vector<1x256xi1> to vector<8x256xi1>
    %71 = vector.broadcast %cst_38 : f32 to vector<8x256xf32>
    %72 = arith.select %70, %68, %71 : vector<8x256xi1>, vector<8x256xf32>
    %73 = arith.addf %54, %72 : vector<8x256xf32>
    %c240_i32 = arith.constant 240 : i32
    %74 = vector.broadcast %c240_i32 : i32 to vector<1x256xi32>
    %75 = arith.cmpi slt, %2, %74 : vector<1x256xi32>
    %c240_i32_39 = arith.constant 240 : i32
    %76 = tpu.dynamic_rotate %65 by %c240_i32_39 dim 1 : vector<8x256xf32>, i32 -> vector<8x256xf32>
    %cst_40 = arith.constant 0.000000e+00 : f32
    %77 = vector.shape_cast %75 : vector<1x256xi1> to vector<1x256xi1>
    %78 = vector.broadcast %77 : vector<1x256xi1> to vector<8x256xi1>
    %79 = vector.broadcast %cst_40 : f32 to vector<8x256xf32>
    %80 = arith.select %78, %76, %79 : vector<8x256xi1>, vector<8x256xf32>
    %81 = arith.addf %73, %80 : vector<8x256xf32>
    %c0_41 = arith.constant 0 : index
    %c0_42 = arith.constant 0 : index
    %82 = vector.load %arg3[%c0_41, %c0_42] : memref<8x8xf32, #tpu.memory_space<vmem>>, vector<8x8xf32>
    %cst_43 = arith.constant dense<0.000000e+00> : vector<8x256xf32>
    %83 = tpu.matmul %82, %81, %cst_43 {dimension_numbers = #tpu.dot_dimension_numbers<[1], [0], [0], [1], [0, 0, 1, 1], [], []>} : vector<8x8xf32>, vector<8x256xf32>, vector<8x256xf32> -> vector<8x256xf32>
    %c0_44 = arith.constant 0 : index
    %c0_45 = arith.constant 0 : index
    %84 = vector.load %arg4[%c0_44, %c0_45] : memref<8x1xf32, #tpu.memory_space<vmem>>, vector<8x1xf32>
    %85 = vector.broadcast %84 : vector<8x1xf32> to vector<8x256xf32>
    %86 = arith.addf %83, %85 : vector<8x256xf32>
    %cst_46 = arith.constant 0.000000e+00 : f32
    %87 = vector.broadcast %cst_46 : f32 to vector<8x256xf32>
    %88 = arith.maximumf %86, %87 : vector<8x256xf32>
    %c0_47 = arith.constant 0 : index
    %c0_48 = arith.constant 0 : index
    %89 = vector.load %arg5[%c0_47, %c0_48] : memref<8x8xf32, #tpu.memory_space<vmem>>, vector<8x8xf32>
    %cst_49 = arith.constant dense<0.000000e+00> : vector<8x256xf32>
    %90 = tpu.matmul %89, %88, %cst_49 {dimension_numbers = #tpu.dot_dimension_numbers<[1], [0], [0], [1], [0, 0, 1, 1], [], []>} : vector<8x8xf32>, vector<8x256xf32>, vector<8x256xf32> -> vector<8x256xf32>
    %c0_50 = arith.constant 0 : index
    %c0_51 = arith.constant 0 : index
    %91 = vector.load %arg6[%c0_50, %c0_51] : memref<8x1xf32, #tpu.memory_space<vmem>>, vector<8x1xf32>
    %92 = vector.broadcast %91 : vector<8x1xf32> to vector<8x256xf32>
    %93 = arith.addf %90, %92 : vector<8x256xf32>
    %94 = arith.negf %93 : vector<8x256xf32>
    %95 = math.exp %94 : vector<8x256xf32>
    %cst_52 = arith.constant 1.000000e+00 : f32
    %96 = vector.broadcast %cst_52 : f32 to vector<8x256xf32>
    %97 = arith.addf %96, %95 : vector<8x256xf32>
    %98 = arith.divf %96, %97 : vector<8x256xf32>
    %99 = arith.mulf %1, %98 : vector<8x256xf32>
    %c0_53 = arith.constant 0 : index
    %c0_54 = arith.constant 0 : index
    %c0_55 = arith.constant 0 : index
    %100 = vector.load %arg7[%c0_53, %c0_54, %c0_55] : memref<1x8x256xf32, #tpu.memory_space<vmem>>, vector<1x8x256xf32>
    %101 = vector.shape_cast %100 : vector<1x8x256xf32> to vector<8x256xf32>
    %102 = vector.shape_cast %99 : vector<8x256xf32> to vector<1x8x256xf32>
    tpu.vector_store %arg7[%c0_53, %c0_54, %c0_55], %102 {strides = array<i32>} : memref<1x8x256xf32, #tpu.memory_space<vmem>>, vector<1x8x256xf32>,
    return
  }
  func.func @transform_0(%arg0: i32) -> (i32, i32, i32) {
    %c0_i32 = arith.constant 0 : i32
    %c0_i32_0 = arith.constant 0 : i32
    %c0_i32_1 = arith.constant 0 : i32
    return %arg0, %c0_i32, %c0_i32_0 : i32, i32, i32
  }
  func.func @transform_1(%arg0: i32) -> (i32, i32, i32) {
    %c0_i32 = arith.constant 0 : i32
    %c0_i32_0 = arith.constant 0 : i32
    %c0_i32_1 = arith.constant 0 : i32
    %c0_i32_2 = arith.constant 0 : i32
    return %c0_i32, %c0_i32_0, %c0_i32_1 : i32, i32, i32
  }
  func.func @transform_2(%arg0: i32) -> (i32, i32) {
    %c0_i32 = arith.constant 0 : i32
    %c0_i32_0 = arith.constant 0 : i32
    %c0_i32_1 = arith.constant 0 : i32
    return %c0_i32, %c0_i32_0 : i32, i32
  }
  func.func @transform_3(%arg0: i32) -> (i32, i32) {
    %c0_i32 = arith.constant 0 : i32
    %c0_i32_0 = arith.constant 0 : i32
    %c0_i32_1 = arith.constant 0 : i32
    return %c0_i32, %c0_i32_0 : i32, i32
  }
  func.func @transform_4(%arg0: i32) -> (i32, i32) {
    %c0_i32 = arith.constant 0 : i32
    %c0_i32_0 = arith.constant 0 : i32
    %c0_i32_1 = arith.constant 0 : i32
    return %c0_i32, %c0_i32_0 : i32, i32
  }
  func.func @transform_5(%arg0: i32) -> (i32, i32) {
    %c0_i32 = arith.constant 0 : i32
    %c0_i32_0 = arith.constant 0 : i32
    %c0_i32_1 = arith.constant 0 : i32
    return %c0_i32, %c0_i32_0 : i32, i32
  }
  func.func @transform_6(%arg0: i32) -> (i32, i32, i32) {
    %c0_i32 = arith.constant 0 : i32
    %c0_i32_0 = arith.constant 0 : i32
    %c0_i32_1 = arith.constant 0 : i32
    return %arg0, %c0_i32, %c0_i32_0 : i32, i32, i32
  }
}

</mosaic_0001>

<bundles_post_ra>
// kernel: tpu_custom_call.1
= control target key start
LH: loop header
LB: loop body
LE: loop exit
PB: predicated region body
PF: predicated region fallthrough
CT: control target
= control target key end

     0   :  { %11 = vsyncpa [#allocation3], 0  ;;  %s1409_s0 = inlined_call_operand.vmem [shape: f32[2,8,256], index: 0, kind: input, shape index: {}]   ;;  %s1410_s1 = inlined_call_operand.vmem [shape: f32[9,8,8], index: 1, kind: input, shape index: {}]   ;;  %s1411_s2 = inlined_call_operand.vmem [shape: f32[8,8], index: 2, kind: input, shape index: {}]   ;;  %s1412_s3 = inlined_call_operand.vmem [shape: f32[8,1], index: 3, kind: input, shape index: {}]   ;;  %s1413_s4 = inlined_call_operand.vmem [shape: f32[8,8], index: 4, kind: input, shape index: {}]   ;;  %s1414_s5 = inlined_call_operand.vmem [shape: f32[8,1], index: 5, kind: input, shape index: {}]   ;;  %s1415_s6 = inlined_call_operand.hbm [shape: f32[2,8,256], index: 6, kind: output, shape index: {}]  }
   0x1   :  { %13 = vsyncpa [#allocation3 + $0x1], 0  ;;  %s1190_s21 = smov 0   ;;  %s1192_s22 = smov 0  }
   0x2   :  { %s1194_s23 = smov 0   ;;  %s1196_s24 = smov 0  }
   0x3 LB: > { %s1211_s25 = sadd.s32 4294967295, %s1148_s24   ;;  %s974_s26 = sadd.s32 4294967294, %s1148_s24   ;;  %s1148_s24 = sphi %s1196_s24, %s1429_s24   ;;  %s1144_s23 = sphi %s1194_s23, %s1428_s23   ;;  %s1140_s22 = sphi %s1192_s22, %s1427_s22   ;;  %s1136_s21 = sphi %s1190_s21, %s1426_s21  }
   0x4   : > { %s1215_s27 = sadd.s32 1, %s1148_s24   ;;  %s157_s28 = sadd.s32 1, %s1144_s23 }
   0x5   : > { %s154_s29 = ssub.s32 %s1148_s24, %s1215_s27  ;;  %p167_p0 = scmp.ne.s32.totalorder %s1144_s23, %s1140_s22 }
   0x6   : > { %p155_p1 = scmp.eq.s32.totalorder %s154_s29, 0  ;;  %p168_p2 = scmp.eq.s32.totalorder %s1211_s25, 1 }
   0x7   : > { %p173_p3 = scmp.ne.s32.totalorder %s1140_s22, %s1136_s21  ;;  %p174_p4 = scmp.eq.s32.totalorder %s974_s26, 1 }
   0x8   : > { %s1226_s30 = scalar_select %p155_p1, %s1144_s23, %s157_s28  }
   0x9   : > { %p1228_p5 = por %p168_p2, %p167_p0  ;;  %p1232_p6 = por %p174_p4, %p173_p3 }
   0xa   : > { %p977_p7 = scmp.ge.s32.totalorder %s1148_s24, 1  ;;  %p215_p8 = scmp.lt.s32.totalorder %s1148_s24, 3 }
   0xc   : > { %p216_p9 = pnand %p977_p7, %p215_p8 }
   0xd   : > { %p245_p10 = scmp.lt.s32.totalorder (!%p216_p9), %s1211_s25, 1  ;;  %s1150_s14 = smov (!%p216_p9), 127  }
   0xe   : > { %219 = sbr.rel (%p216_p9) target bundleno = 728 (0x2d8), region = 44  ;;  %s1151_s15 = smov (!%p216_p9), 1  }
   0xf   : > { %s1152_s19 = smov (!%p216_p9), 16   ;;  %s1153_s20 = smov (!%p216_p9), 112  }
  0x10   : > { %s1031_s16 = sshll.u32 (!%p216_p9), %s1211_s25, 4  ;;  %s1106_s12 = scalar_lea.hbm (!%p216_p9), %s1415_s6, 32 }
  0x13   : > { %s246_s9 = scalar_select %p245_p10, %s1211_s25, 1  ;;  %v981_v2 = vld [vmem:[%s1410_s1 + $0x8] sm:$0xff]  ;;  %vm312_vm0 = vcmask 64512   ;;  %v252_v3 = vlaneseq  ;;  %v309_v20 = vld [vmem:[%s1410_s1] sm:$0xff]  ;;  %v988_v21 = vld [vmem:[%s1410_s1 + $0x10] sm:$0xff]  ;;  %v1154_v59 = vmov 0  }
  0x14   : > { %v994_v22 = vld [vmem:[%s1410_s1 + $0x20] sm:$0xff]  ;;  %v993_v23 = vld [vmem:[%s1410_s1 + $0x18] sm:$0xff]  ;;  %v1001_v24 = vld [vmem:[%s1410_s1 + $0x28] sm:$0xff]  ;;  %1076 = vset.pattern.permute.xlu2 %v1154_v59  ;;  %1077 = vset.pattern.permute.xlu0 %v1154_v59 }
  0x15   : > { %s1030_s10 = sshll.u32 %s246_s9, 4  ;;  %v1258_v4 = vand.u32 127, %v252_v3  ;;  %v1007_v25 = vld [vmem:[%s1410_s1 + $0x38] sm:$0xff]  ;;  %v1006_v26 = vld [vmem:[%s1410_s1 + $0x30] sm:$0xff]  ;;  %v1014_v27 = vld [vmem:[%s1410_s1 + $0x40] sm:$0xff] }
  0x16   : > { %s249_s13 = scalar_lea.vmem %s1409_s0, %s1030_s10  ;;  %v755_v58 = vld [vmem:[%s1412_s3] sm:$0xff] }
  0x17   : > { %v1243_v0 = vld [vmem:[%s249_s13] sm:$0xff]  ;;  %v1247_v1 = vld [vmem:[%s249_s13 + $0x8] sm:$0xff]  ;;  %v1261_v5 = vadd.s32 128, %v1258_v4  ;;  %v259_v8 = vand.u32 15, %v1258_v4  ;;  %vm285_vm1 = vcmp.lt.s32.totalorder %v1258_v4, 1  ;;  %vm300_vm2 = vcmp.lt.s32.totalorder %v1258_v4, 127 }
  0x18   : > { %296 = vrot.lane.b32.xlu1 %v1243_v0, %s1150_s14  ;;  %281 = vrot.lane.b32.xlu0 %v1243_v0, %s1151_s15  ;;  %vm726_vm7 = vcmp.lt.s32.totalorder %v1258_v4, 16  ;;  %vm720_vm8 = vcmp.ge.s32.totalorder %v1258_v4, 16  ;;  %vm743_vm9 = vcmp.lt.s32.totalorder %v1258_v4, 112  ;;  %v807_v4 = vld [vmem:[%s1414_s5] sm:$0xff] }
  0x19   : > { %331 = vmatpush.msra.mxu0 %v1243_v0  ;;  %351 = vmatpush.msra.mxu1 %v1247_v1  ;;  %v266_v9 = vand.u32 15, %v1261_v5  ;;  %vm1267_vm3 = vcmp.ge.s32.totalorder %v259_v8, 1  ;;  %vm1275_vm5 = vcmp.le.s32.totalorder %v259_v8, 14  ;;  %vm738_vm10 = vcmp.lt.s32.totalorder %v1261_v5, 240 }
  0x1a   : > { %982 = vmatmul.msk.f32.vlgmr.msra.gmra.mxu0 %vm312_vm0, %v981_v2  ;;  %983 = vmatmul.msk.f32.vlgmr.msra.gmra.mxu1 %vm312_vm0, %v981_v2 }
  0x1b   : > { %vm1271_vm4 = vcmp.ge.s32.totalorder %v266_v9, 1  ;;  %vm1279_vm6 = vcmp.le.s32.totalorder %v266_v9, 14 }
  0x20   : > { %298 = vrot.lane.b32.xlu1 %v1247_v1, %s1150_s14  ;;  %283 = vrot.lane.b32.xlu0 %v1247_v1, %s1151_s15  ;;  %s242_s14 = sand.u32 1, %s1140_s22  }
  0x21   : > { %s978_s15 = sshll.u32 %s242_s14, 4  ;;  %s899_s28 = scalar_lea.sflag [#allocation3], %s242_s14 }
  0x22   : > { %s244_s25 = scalar_lea.vmem [#allocation2], %s978_s15 }
  0x8a   : > { %v297_v6 = vpop.permute.xlu1 %296  ;;  %v282_v7 = vpop.permute.xlu0 %281 }
  0x92   : > { %v299_v12 = vpop.permute.xlu1 %298  ;;  %v284_v13 = vpop.permute.xlu0 %283 }
  0x93   : > { %v287_v16 = vsel %vm285_vm1, %v284_v13, %v282_v7  ;;  %v286_v17 = vsel %vm285_vm1, %v282_v7, %v284_v13  ;;  %v301_v18 = vsel %vm300_vm2, %v297_v6, %v299_v12  ;;  %v302_v19 = vsel %vm300_vm2, %v299_v12, %v297_v6  ;;  %v754_v13 = vld [vmem:[%s1411_s2] sm:$0xff] }
  0x94   : > { %984 = vmatpush.msk.msra.mxu2 %vm1267_vm3, %v287_v16  ;;  %986 = vmatpush.msk.msra.mxu3 %vm1271_vm4, %v286_v17 }
  0x95   : > { %989 = vmatpush.msk.msrb.mxu0 %vm1275_vm5, %v301_v18  ;;  %991 = vmatpush.msk.msrb.mxu1 %vm1279_vm6, %v302_v19 }
  0x96   : > { %985 = vmatmul.msk.f32.vlgmr.msra.gmra.mxu2 %vm312_vm0, %v309_v20  ;;  %987 = vmatmul.msk.f32.vlgmr.msra.gmra.mxu3 %vm312_vm0, %v309_v20  ;;  %v806_v20 = vld [vmem:[%s1413_s4] sm:$0xff] }
  0x97   : > { %990 = vmatmul.msk.f32.vlgmr.msrb.gmra.mxu0 %vm312_vm0, %v988_v21  ;;  %992 = vmatmul.msk.f32.vlgmr.msrb.gmra.mxu1 %vm312_vm0, %v988_v21  ;;  %v333_v28 = vpop.f32.mrf.mxu0  ;;  %v353_v29 = vpop.f32.mrf.mxu1 }
  0x98   : > { %468 = vmatpush.msrb.mxu2 %v1243_v0  ;;  %488 = vmatpush.msrb.mxu3 %v1247_v1 }
  0x99   : > { %997 = vmatpush.msk.msra.mxu0 %vm1267_vm3, %v287_v16  ;;  %999 = vmatpush.msk.msra.mxu1 %vm1271_vm4, %v286_v17 }
  0x9a   : > { %1002 = vmatpush.msk.msra.mxu2 %vm1275_vm5, %v301_v18  ;;  %1004 = vmatpush.msk.msra.mxu3 %vm1279_vm6, %v302_v19 }
  0x9b   : > { %605 = vmatpush.msrb.mxu0 %v1243_v0  ;;  %625 = vmatpush.msrb.mxu1 %v1247_v1 }
  0x9e   : > { %995 = vmatmul.msk.f32.vlgmr.msrb.gmra.mxu2 %vm312_vm0, %v994_v22  ;;  %996 = vmatmul.msk.f32.vlgmr.msrb.gmra.mxu3 %vm312_vm0, %v994_v22 }
  0x9f   : > { %998 = vmatmul.msk.f32.vlgmr.msra.gmra.mxu0 %vm312_vm0, %v993_v23  ;;  %1000 = vmatmul.msk.f32.vlgmr.msra.gmra.mxu1 %vm312_vm0, %v993_v23 }
  0xa0   : > { %1010 = vmatpush.msk.msrb.mxu2 %vm1267_vm3, %v287_v16  ;;  %1012 = vmatpush.msk.msrb.mxu3 %vm1271_vm4, %v286_v17 }
  0xa1   : > { %1015 = vmatpush.msk.msra.mxu0 %vm1275_vm5, %v301_v18  ;;  %1017 = vmatpush.msk.msra.mxu1 %vm1279_vm6, %v302_v19 }
  0xa6   : > { %1003 = vmatmul.msk.f32.vlgmr.msra.gmra.mxu2 %vm312_vm0, %v1001_v24  ;;  %1005 = vmatmul.msk.f32.vlgmr.msra.gmra.mxu3 %vm312_vm0, %v1001_v24 }
  0xa7   : > { %1008 = vmatmul.msk.f32.vlgmr.msrb.gmra.mxu0 %vm312_vm0, %v1007_v25  ;;  %1009 = vmatmul.msk.f32.vlgmr.msrb.gmra.mxu1 %vm312_vm0, %v1007_v25 }
  0xae   : > { %1011 = vmatmul.msk.f32.vlgmr.msrb.gmra.mxu2 %vm312_vm0, %v1006_v26  ;;  %1013 = vmatmul.msk.f32.vlgmr.msrb.gmra.mxu3 %vm312_vm0, %v1006_v26 }
  0xaf   : > { %1016 = vmatmul.msk.f32.vlgmr.msra.gmra.mxu0 %vm312_vm0, %v1014_v27  ;;  %1018 = vmatmul.msk.f32.vlgmr.msra.gmra.mxu1 %vm312_vm0, %v1014_v27 }
 0x114   : > { %v421_v30 = vpop.f32.mrf.mxu0  ;;  %v441_v31 = vpop.f32.mrf.mxu1 }
 0x119   : > { %v376_v32 = vpop.f32.mrf.mxu2  ;;  %v396_v33 = vpop.f32.mrf.mxu3 }
 0x11a   : > { %v377_v34 = vadd.f32 %v376_v32, %v333_v28  ;;  %v397_v38 = vadd.f32 %v396_v33, %v353_v29 }
 0x11c   : > { %v444_v35 = vadd.f32 %v421_v30, %v377_v34  ;;  %v513_v36 = vpop.f32.mrf.mxu0  ;;  %v533_v37 = vpop.f32.mrf.mxu1  ;;  %v445_v43 = vadd.f32 %v441_v31, %v397_v38 }
 0x11e   : > { %722 = vrot.lane.b32.xlu2 %v444_v35, %s1152_s19 }
 0x121   : > { %v470_v39 = vpop.f32.mrf.mxu2  ;;  %v490_v40 = vpop.f32.mrf.mxu3 }
 0x122   : > { %v514_v41 = vadd.f32 %v513_v36, %v470_v39  ;;  %v534_v42 = vadd.f32 %v533_v37, %v490_v40 }
 0x124   : > { %v607_v44 = vpop.f32.mrf.mxu0  ;;  %v627_v45 = vpop.f32.mrf.mxu1 }
 0x126   : > { %724 = vrot.lane.b32.xlu2 %v445_v43, %s1152_s19  ;;  %s910_s19 = scalar_lea.hbm %s1415_s6, %s1031_s16 }
 0x127   : > { %s914_s26 = sshll.u32 %s910_s19, 4  ;;  %s915_s26 = int_to_ptr.hbm [resolvable:$true] %s914_s26 }
 0x128   : > { %s1100_s29 = sshra.s32 %s915_s26, 4  ;;  %s1101_s29 = int_to_ptr.hbm [resolvable:$true] %s1100_s29 }
 0x129   : > { %v558_v46 = vpop.f32.mrf.mxu2  ;;  %v578_v47 = vpop.f32.mrf.mxu3  ;;  %s1102_s9 = scalar_lea.hbm %s1101_s29, 16  ;;  %p1107_p0 = scmp.lt.s32.totalorder %s1101_s29, %s1415_s6 }
 0x12a   : > { %v581_v48 = vadd.f32 %v558_v46, %v514_v41  ;;  %v582_v49 = vadd.f32 %v578_v47, %v534_v42  ;;  %p1103_p11 = scmp.ne.s32.totalorder %s1101_s29, %s1102_s9  ;;  %p1108_p1 = scmp.lt.s32.totalorder %s1106_s12, %s1102_s9 }
 0x12c   : > { %v695_v50 = vpop.f32.mrf.mxu0  ;;  %v715_v51 = vpop.f32.mrf.mxu1  ;;  %p1104_p12 = pnand %p1103_p11, %p1228_p5  ;;  %p1109_p2 = por %p1108_p1, %p1107_p0 }
 0x12e   : > { %758 = vperm.xlu2 %1076, %v755_v58   ;;  %p1105_p13 = pneg %p1104_p12 }
 0x130   : > { %p1110_p3 = pnand %p1109_p2, %p1105_p13 }
 0x131   : > { %v650_v52 = vpop.f32.mrf.mxu2  ;;  %v670_v53 = vpop.f32.mrf.mxu3 }
 0x132   : > { %v651_v54 = vadd.f32 %v650_v52, %v607_v44  ;;  %v671_v55 = vadd.f32 %v670_v53, %v627_v45 }
 0x134   : > { %v718_v56 = vadd.f32 %v695_v50, %v651_v54  ;;  %v719_v57 = vadd.f32 %v715_v51, %v671_v55 }
 0x136   : > { %741 = vrot.lane.b32.xlu1 %v719_v57, %s1153_s20  ;;  %739 = vrot.lane.b32.xlu0 %v718_v56, %s1153_s20  ;;  %s912_s20 = sshll.u32 %s244_s25, 4  ;;  %s913_s20 = int_to_ptr.vmem [resolvable:$true] %s912_s20 }
 0x13e   : > { %810 = vperm.xlu0 %1077, %v807_v4  }
 0x178   : > { %v723_v60 = vpop.permute.xlu2 %722 }
 0x180   : > { %v725_v61 = vpop.permute.xlu2 %724 }
 0x181   : > { %v728_v62 = vsel %vm726_vm7, %v725_v61, %v723_v60  ;;  %v727_v2 = vsel %vm726_vm7, %v723_v60, %v725_v61 }
 0x182   : > { %v733_v63 = vsel %vm720_vm8, %v728_v62, 0.0  ;;  %v736_v8 = vadd.f32 %v727_v2, %v582_v49 }
 0x183   : > { %v735_v3 = vadd.f32 %v733_v63, %v581_v48 }
 0x188   : > { %v759_v5 = vpop.permute.xlu2 %758 }
 0x1a8   : > { %v742_v6 = vpop.permute.xlu1 %741  ;;  %v740_v7 = vpop.permute.xlu0 %739 }
 0x1a9   : > { %v744_v9 = vsel %vm743_vm9, %v740_v7, %v742_v6  ;;  %v745_v10 = vsel %vm743_vm9, %v742_v6, %v740_v7 }
 0x1aa   : > { %v751_v11 = vsel %vm738_vm10, %v745_v10, 0.0  ;;  %v752_v12 = vadd.f32 %v744_v9, %v735_v3 }
 0x1ab   : > { %v753_v14 = vadd.f32 %v751_v11, %v736_v8 }
 0x1ac   : > { %779 = vmatpush.msra.mxu2 %v752_v12 }
 0x1ad   : > { %1019 = vmatmul.msk.f32.vlgmr.msra.gmra.mxu2 %vm312_vm0, %v754_v13  ;;  %799 = vmatpush.msra.mxu3 %v753_v14 }
 0x1ae   : > { %1020 = vmatmul.msk.f32.vlgmr.msra.gmra.mxu3 %vm312_vm0, %v754_v13 }
 0x1b0   : > { %v811_v22 = vpop.permute.xlu0 %810 }
 0x230   : > { %v781_v15 = vpop.f32.mrf.mxu2 }
 0x231   : > { %v782_v16 = vadd.f32 %v781_v15, %v759_v5  ;;  %v801_v17 = vpop.f32.mrf.mxu3 }
 0x232   : > { %v802_v18 = vadd.f32 %v801_v17, %v759_v5 }
 0x233   : > { %v804_v19 = vmax.f32 %v782_v16, 0.0 }
 0x234   : > { %v805_v21 = vmax.f32 %v802_v18, 0.0 }
 0x235   : > { %831 = vmatpush.msrb.mxu0 %v804_v19 }
 0x236   : > { %1021 = vmatmul.msk.f32.vlgmr.msrb.gmra.mxu0 %vm312_vm0, %v806_v20  ;;  %851 = vmatpush.msrb.mxu1 %v805_v21 }
 0x237   : > { %1022 = vmatmul.msk.f32.vlgmr.msrb.gmra.mxu1 %vm312_vm0, %v806_v20 }
 0x2b3   : > { %v833_v23 = vpop.f32.mrf.mxu0 }
 0x2b4   : > { %v834_v24 = vadd.f32 %v833_v23, %v811_v22  ;;  %v853_v25 = vpop.f32.mrf.mxu1 }
 0x2b5   : > { %v854_v26 = vadd.f32 %v853_v25, %v811_v22 }
 0x2b6   : > { %v1023_v27 = vmul.f32 -1.442695, %v834_v24 }
 0x2b7   : > { %v1024_v28 = vmul.f32 -1.442695, %v854_v26 }
 0x2b8   : > { %1078 = vpow2.f32 %v1023_v27 }
 0x2b9   : > { %1080 = vpow2.f32 %v1024_v28 }
 0x2be   : > { %v1079_v29 = vpop.eup %1078 }
 0x2bf   : > { %v1081_v30 = vpop.eup %1080  ;;  %v862_v31 = vadd.f32 1.0, %v1079_v29 }
 0x2c0   : > { %v863_v32 = vadd.f32 1.0, %v1081_v30 }
 0x2c1   : > { %1082 = vrcp.f32 %v862_v31  ;;  %v875_v39 = vand.u32 2147483648, %v862_v31  ;;  %v873_v41 = vand.u32 2147483647, %v862_v31  ;;  %vm869_vm13 = vweird.f32 %v862_v31 }
 0x2c2   : > { %1084 = vrcp.f32 %v863_v32  ;;  %v890_v42 = vand.u32 2147483648, %v863_v32  ;;  %v888_v44 = vand.u32 2147483647, %v863_v32  ;;  %vm884_vm15 = vweird.f32 %v863_v32 }
 0x2c3   : > { %v876_v46 = vor.u32 1.1754944e-38, %v875_v39  ;;  %vm874_vm0 = vcmp.eq.f32.partialorder %v873_v41, 8.507059e+37 }
 0x2c4   : > { %v891_v49 = vor.u32 1.1754944e-38, %v890_v42  ;;  %vm889_vm2 = vcmp.eq.f32.partialorder %v888_v44, 8.507059e+37 }
 0x2c7   : > { %v1083_v33 = vpop.eup %1082 }
 0x2c8   : > { %v1085_v34 = vpop.eup %1084  ;;  %v865_v35 = vmul.f32 %v1083_v33, %v862_v31  ;;  %vm870_vm11 = vweird.f32 %v1083_v33 }
 0x2c9   : > { %v880_v36 = vmul.f32 %v1085_v34, %v863_v32  ;;  %vm885_vm12 = vweird.f32 %v1085_v34  ;;  %vm871_vm14 = vmor %vm869_vm13, %vm870_vm11 }
 0x2ca   : > { %v866_v37 = vsub.f32 1.0, %v865_v35  ;;  %vm886_vm1 = vmor %vm884_vm15, %vm885_vm12 }
 0x2cb   : > { %v881_v38 = vsub.f32 1.0, %v880_v36 }
 0x2cc   : > { %v867_v40 = vmul.f32 %v1083_v33, %v866_v37 }
 0x2cd   : > { %v882_v43 = vmul.f32 %v1085_v34, %v881_v38 }
 0x2ce   : > { %v868_v45 = vadd.f32 %v1083_v33, %v867_v40 }
 0x2cf   : > { %v883_v47 = vadd.f32 %v1085_v34, %v882_v43 }
 0x2d0   : > { %v872_v48 = vsel %vm871_vm14, %v1083_v33, %v868_v45 }
 0x2d1   : > { %v877_v50 = vsel %vm874_vm0, %v876_v46, %v872_v48  ;;  %v887_v51 = vsel %vm886_vm1, %v1085_v34, %v883_v47 }
 0x2d2   : > { %v892_v52 = vsel %vm889_vm2, %v891_v49, %v887_v51  ;;  %v894_v53 = vmul.f32 %v877_v50, %v1243_v0 }
 0x2d3   : > { %v895_v54 = vmul.f32 %v892_v52, %v1247_v1 }
 0x2d4   : > { %896 = vst [vmem:[%s244_s25] sm:$0xff] %v894_v53 }
 0x2d5   : > { %897 = vst [vmem:[%s244_s25 + $0x8] sm:$0xff] %v895_v54 }
 0x2d6   : > { %1113 = shalt.err (!%p1110_p3)
}
 0x2d7   : > { %1032 = dma.vmem_to_hbm [thread:$0]  (%p1228_p5), %s913_s20, 256, %s915_s26, %s899_s28  }
 0x2d8 PF: > { %p1038_p4 = scmp.ge.s32.totalorder %s1148_s24, 2  ;;  %s926_s14 = sand.u32 1, %s1136_s21  }
 0x2d9   : > { %s927_s16 = scalar_lea.sflag [#allocation3], %s926_s14 }
 0x2da   : > { %p1035_p7 = pnand %p1038_p4, %p1232_p6 }
 0x2dc   : > { %p1036_p8 = pneg %p1035_p7 }
 0x2de   : > { %1131 = dma.done.wait (%p1036_p8), %s927_s16, 256  }
 0x2df   : > { %1133 = vsyncadd (%p1036_p8), %s927_s16, 4294967040  ;;  %p16_p9 = scmp.ge.s32.totalorder %s1215_s27, 4   ;;  %s1426_s21 = smov %s1140_s22 }
 0x2e0   : > { %s1427_s22 = smov %s1144_s23  ;;  %s1428_s23 = smov %s1226_s30 }
 0x2e1   : > { %s1429_s24 = smov %s1215_s27  ;;  %18 = sbr.rel (!%p16_p9) target bundleno = 3 (0x3), region = 87 }
 0x2e6   :  { %933 = vsyncpa [#allocation3], 1 }
 0x2e7   :  { %935 = vsyncpa [#allocation3 + $0x1], 1 }

</bundles_post_ra>
